<compile_context>
chip_gen: v5e
topology: v5e:2x2
jax: 0.10.0
libtpu: 0.0.40
codegen_flags: <defaults>
</compile_context>

<pallas_src>
import functools

import jax
import jax.numpy as jnp
from jax.experimental import pallas as pl
from jax.experimental.pallas import tpu as pltpu


def _round_up(x, m):
    return ((x + m - 1) // m) * m


def _pick_tm(M):
    """Pick (TM, Mp) for the matmul M axis: big tiles, bounded zero-padding."""
    Mp8 = _round_up(M, 8)
    if Mp8 <= 512:
        return Mp8, Mp8
    for tm in (512, 256):
        mp = _round_up(Mp8, tm)
        if mp - Mp8 <= Mp8 // 8:          # allow <=12.5% pad waste
            return tm, mp
    return 128, _round_up(Mp8, 128)


def _pick_tn(Np):
    if Np >= 1024 and Np % 512 == 0:
        return 512
    if Np % 256 == 0:
        return 256
    return 128


def _ensure_two_parallel_tiles(TM, Mp, TN, Np):
    """v7x shards the 'parallel' grid axes over 2 TensorCores: make sure the
    (i, j) grid has at least two tiles so one core is not left idle."""
    if (Mp // TM) * (Np // TN) >= 2:
        return TM, TN
    if TM >= 16 and TM % 16 == 0:
        return TM // 2, TN
    if TN >= 256:
        return TM, TN // 2
    return TM, TN


# ----------------------------------------------------------------------------
# Pallas matmul kernel: bf16 operands, f32 accumulation, fused bias,
# optional fused residual-add, optional ReLU.
# ----------------------------------------------------------------------------
def _mm_kernel(a_ref, b_ref, c_ref, *rest, relu, has_res, multi_k):
    if multi_k:
        if has_res:
            r_ref, o_ref, acc_ref = rest
        else:
            o_ref, acc_ref = rest
            r_ref = None

        @pl.when(pl.program_id(2) == 0)
        def _():
            acc_ref[...] = jnp.zeros_like(acc_ref)

        acc_ref[...] += jnp.dot(a_ref[...], b_ref[...],
                                preferred_element_type=jnp.float32)

        @pl.when(pl.program_id(2) == pl.num_programs(2) - 1)
        def _():
            y = acc_ref[...] + c_ref[...]
            if has_res:
                y = y + r_ref[...].astype(jnp.float32)
            if relu:
                y = jnp.maximum(y, 0.0)
            o_ref[...] = y.astype(o_ref.dtype)
    else:
        # Single k step: no accumulator scratch, write the output directly.
        if has_res:
            r_ref, o_ref = rest
        else:
            (o_ref,) = rest
            r_ref = None
        y = jnp.dot(a_ref[...], b_ref[...],
                    preferred_element_type=jnp.float32) + c_ref[...]
        if has_res:
            y = y + r_ref[...].astype(jnp.float32)
        if relu:
            y = jnp.maximum(y, 0.0)
        o_ref[...] = y.astype(o_ref.dtype)


def _run_matmul(inputs, in_specs, Mp, Np, TM, TN, gk, relu, has_res,
                out_dtype):
    multi_k = gk > 1
    scratch = [pltpu.VMEM((TM, TN), jnp.float32)] if multi_k else []
    return pl.pallas_call(
        functools.partial(_mm_kernel, relu=relu, has_res=has_res,
                          multi_k=multi_k),
        out_shape=jax.ShapeDtypeStruct((Mp, Np), out_dtype),
        grid_spec=pltpu.PrefetchScalarGridSpec(
            num_scalar_prefetch=0,
            grid=(Mp // TM, Np // TN, gk),
            in_specs=in_specs,
            out_specs=pl.BlockSpec((TM, TN), lambda i, j, k: (i, j)),
            scratch_shapes=scratch,
        ),
        compiler_params=pltpu.CompilerParams(
            dimension_semantics=("parallel", "parallel", "arbitrary")),
    )(*inputs)


def matmul_bias(a, w_p, b_p, n_out, relu=False, res=None,
                out_dtype=jnp.bfloat16):
    """(a @ w_p) + b_p (+ res), optional ReLU.

    a    : [M, K]   (any float dtype, cast to bf16)
    w_p  : [Kp, Np] bf16, BN scale already folded in, K/N padded at init
    b_p  : [1, Np]  f32 bias
    res  : optional [M, Np] residual (added before ReLU)
    Returns [M, n_out] in `out_dtype`.
    """
    M, K = a.shape
    Kp, Np = w_p.shape
    TM, Mp = _pick_tm(M)
    TN = _pick_tn(Np)
    TM, TN = _ensure_two_parallel_tiles(TM, Mp, TN, Np)

    # Collapse the k loop when the whole contraction fits comfortably in VMEM.
    if Kp <= 2304:
        TK = Kp
    elif Kp % 512 == 0:
        TK = 512
    elif Kp % 256 == 0:
        TK = 256
    else:
        TK = 128
    gk = Kp // TK

    a_bf = a.astype(jnp.bfloat16)
    if (Mp != M) or (Kp != K):
        a_bf = jnp.pad(a_bf, ((0, Mp - M), (0, Kp - K)))

    inputs = [a_bf, w_p, b_p]
    in_specs = [
        pl.BlockSpec((TM, TK), lambda i, j, k: (i, k)),
        pl.BlockSpec((TK, TN), lambda i, j, k: (k, j)),
        pl.BlockSpec((1, TN), lambda i, j, k: (0, j)),
    ]
    has_res = res is not None
    if has_res:
        r = res.astype(jnp.bfloat16)
        if (Mp != M) or (Np != r.shape[1]):
            r = jnp.pad(r, ((0, Mp - M), (0, Np - r.shape[1])))
        inputs.append(r)
        in_specs.append(pl.BlockSpec((TM, TN), lambda i, j, k: (i, j)))

    out = _run_matmul(inputs, in_specs, Mp, Np, TM, TN, gk, relu, has_res,
                      out_dtype)
    if Mp == M and Np == n_out:
        return out
    return out[:M, :n_out]


def matmul_taps(a_t, w_t, b_p, n_out, relu=False, res=None,
                out_dtype=jnp.bfloat16):
    """Tap-stacked conv matmul: sum_t a_t[t] @ w_t[t] + b_p (+ res), opt. ReLU.

    a_t : [T, M, C]   bf16 tap-stacked patches (T = kh*kw)
    w_t : [T, C, Np]  bf16 BN-folded weights
    b_p : [1, Np]     f32 bias
    The tap index is folded into the innermost ("arbitrary") k grid axis.
    """
    T, M, C = a_t.shape
    _, _, Np = w_t.shape
    TM, Mp = _pick_tm(M)
    TN = _pick_tn(Np)
    TM, TN = _ensure_two_parallel_tiles(TM, Mp, TN, Np)

    a_t = a_t.astype(jnp.bfloat16)
    if Mp != M:
        a_t = jnp.pad(a_t, ((0, 0), (0, Mp - M), (0, 0)))

    inputs = [a_t, w_t, b_p]
    in_specs = [
        pl.BlockSpec((None, TM, C), lambda i, j, k: (k, i, 0)),
        pl.BlockSpec((None, C, TN), lambda i, j, k: (k, 0, j)),
        pl.BlockSpec((1, TN), lambda i, j, k: (0, j)),
    ]
    has_res = res is not None
    if has_res:
        r = res.astype(jnp.bfloat16)
        if (Mp != M) or (Np != r.shape[1]):
            r = jnp.pad(r, ((0, Mp - M), (0, Np - r.shape[1])))
        inputs.append(r)
        in_specs.append(pl.BlockSpec((TM, TN), lambda i, j, k: (i, j)))

    out = _run_matmul(inputs, in_specs, Mp, Np, TM, TN, T, relu, has_res,
                      out_dtype)
    if Mp == M and Np == n_out:
        return out
    return out[:M, :n_out]


# ----------------------------------------------------------------------------
# Maxpool / avgpool kernels
# ----------------------------------------------------------------------------
def _max9_kernel(p_ref, o_ref):
    m = p_ref[0]
    for t in range(1, 9):                      # running max, in-register
        m = jnp.maximum(m, p_ref[t])
    o_ref[...] = m.astype(o_ref.dtype)


def maxpool_3x3_s2(x):
    """PyTorch MaxPool2d(kernel=3, stride=2, padding=1) on NHWC (bf16) input."""
    # TODO(synk): a fully fused maxpool reading x once (overlapping-window DMA)
    # would avoid the 9 shifted stride-2 slices; the stem maxpool is a small
    # fraction of total traffic so the tiled 9-tap reduce is kept.
    N, H, W, C = x.shape
    Ho = (H + 2 - 3) // 2 + 1
    Wo = (W + 2 - 3) // 2 + 1
    xp = jnp.pad(x, ((0, 0), (1, 1), (1, 1), (0, 0)),
                 constant_values=-jnp.inf)
    cols = [xp[:, i:i + 2 * Ho:2, j:j + 2 * Wo:2, :]
            for i in range(3) for j in range(3)]
    patches = jnp.stack(cols, axis=0).reshape(9, N * Ho * Wo, C)
    M = N * Ho * Wo
    TM = min(512, _round_up(M, 8))
    Mp = _round_up(M, TM)
    if Mp != M:
        patches = jnp.pad(patches, ((0, 0), (0, Mp - M), (0, 0)),
                          constant_values=-jnp.inf)
    out = pl.pallas_call(
        _max9_kernel,
        out_shape=jax.ShapeDtypeStruct((Mp, C), x.dtype),
        grid=(Mp // TM,),
        in_specs=[pl.BlockSpec((9, TM, C), lambda i: (0, i, 0))],
        out_specs=pl.BlockSpec((TM, C), lambda i: (i, 0)),
        compiler_params=pltpu.CompilerParams(
            dimension_semantics=("parallel",)),
    )(patches)
    return out[:M].reshape(N, Ho, Wo, C)


def _avgpool_kernel(x_ref, o_ref):
    m = jnp.mean(x_ref[...].astype(jnp.float32), axis=1, keepdims=True)
    o_ref[...] = jnp.broadcast_to(m, o_ref.shape)


def global_avgpool(x):
    """Global average pool over H,W (the custom AvgPool module). NHWC -> [N, C]."""
    N, H, W, C = x.shape
    HW = H * W
    x3 = x.reshape(N, HW, C)                         # free reshape, no transpose
    out = pl.pallas_call(
        _avgpool_kernel,
        out_shape=jax.ShapeDtypeStruct((N, 8, C), jnp.float32),
        grid=(N,),
        in_specs=[pl.BlockSpec((1, HW, C), lambda i: (i, 0, 0))],
        out_specs=pl.BlockSpec((1, 8, C), lambda i: (i, 0, 0)),
        compiler_params=pltpu.CompilerParams(
            dimension_semantics=("parallel",)),
    )(x3)
    return out[:, 0, :]                              # [N, C] f32


# ----------------------------------------------------------------------------
# Conv / block glue (patch extraction in plain JAX, matmul in Pallas)
# ----------------------------------------------------------------------------
def conv_bn(x, cw, relu, res=None):
    """cw: prepared conv dict (BN-folded bf16 weights, f32 bias, metadata).
    `res` is an optional [M_out, Cout] residual fused into the matmul epilogue."""
    kh, kw, cin, cout = cw['kh'], cw['kw'], cw['cin'], cw['cout']
    stride, pad = cw['stride'], cw['pad']
    N, H, W, _ = x.shape
    Ho = (H + 2 * pad - kh) // stride + 1
    Wo = (W + 2 * pad - kw) // stride + 1
    M = N * Ho * Wo

    if kh == 1 and kw == 1 and pad == 0:
        xs = x if stride == 1 else x[:, ::stride, ::stride, :]
        patches = xs.reshape(M, cin)
        y = matmul_bias(patches, cw['w'], cw['b'], cout, relu=relu, res=res)
    elif cw['taps']:
        # 3x3 convs: tap-stacked patches (9, M, Cin); tap index goes into the
        # k grid axis. Avoids the channel-interleaving concat+reshape relayout
        # and any Cin padding.
        xp = jnp.pad(x, ((0, 0), (pad, pad), (pad, pad), (0, 0)))
        views = [xp[:, i:i + stride * Ho:stride, j:j + stride * Wo:stride, :]
                 .reshape(M, cin)
                 for i in range(kh) for j in range(kw)]
        a_t = jnp.stack(views, axis=0)
        y = matmul_taps(a_t, cw['w'], cw['b'], cout, relu=relu, res=res)
    else:
        # Stem 7x7 conv (Cin=3): classic im2col, K padded to 256 at init.
        xp = jnp.pad(x, ((0, 0), (pad, pad), (pad, pad), (0, 0)))
        cols = [xp[:, i:i + stride * Ho:stride, j:j + stride * Wo:stride, :]
                for i in range(kh) for j in range(kw)]
        patches = jnp.concatenate(cols, axis=-1).reshape(M, kh * kw * cin)
        y = matmul_bias(patches, cw['w'], cw['b'], cout, relu=relu, res=res)
    return y.reshape(N, Ho, Wo, cout)


def bottleneck(x, p):
    out = conv_bn(x, p['conv1'], relu=True)
    out = conv_bn(out, p['conv2'], relu=True)
    if 'down' in p:
        identity = conv_bn(x, p['down'], relu=False)
    else:
        identity = x
    Ni, Hi, Wi, Ci = identity.shape
    res2d = identity.reshape(Ni * Hi * Wi, Ci)
    # Residual add + ReLU fused into conv3's matmul epilogue.
    return conv_bn(out, p['conv3'], relu=True, res=res2d)


def resnet50_forward(params, x_nchw):
    x = jnp.transpose(x_nchw, (0, 2, 3, 1)).astype(jnp.bfloat16)  # NCHW -> NHWC
    x = conv_bn(x, params['conv1'], relu=True)
    x = maxpool_3x3_s2(x)
    for blocks in params['layers']:
        for blk in blocks:
            x = bottleneck(x, blk)
    feat = global_avgpool(x)                                      # [N, 2048] f32
    # TODO(synk): the reference's `dropout` flag is an undefined global; treated
    # as False (nn.Dropout is identity in eval mode anyway).
    out = matmul_bias(feat, params['fc_w'], params['fc_b'], 1,
                      relu=False, out_dtype=jnp.float32)
    return out                                                    # [N, 1]


# ----------------------------------------------------------------------------
# Deterministic parameter initialization (shapes follow torchvision resnet50).
# BN (eval mode) is folded into the conv weights; weights are pre-reshaped,
# cast to bf16 and padded once, here.
# ----------------------------------------------------------------------------
def make_conv_bn(key, kh, kw, cin, cout, stride, pad, eps=1e-5):
    kwt, k1, k2, k3, k4 = jax.random.split(key, 5)
    w = jax.random.normal(kwt, (kh, kw, cin, cout), jnp.float32) * \
        jnp.sqrt(2.0 / (kh * kw * cin))
    gamma = jax.random.uniform(k1, (cout,), jnp.float32, 0.8, 1.2)
    beta = 0.05 * jax.random.normal(k2, (cout,), jnp.float32)
    mean = 0.05 * jax.random.normal(k3, (cout,), jnp.float32)
    var = jax.random.uniform(k4, (cout,), jnp.float32, 0.8, 1.2)
    scale = gamma / jnp.sqrt(var + eps)
    bias = beta - mean * scale

    Np = _round_up(cout, 128)
    use_taps = (kh == 3 and kw == 3)
    w_folded = w * scale                                    # fold BN scale
    if use_taps:
        # Per-tap layout: [9, Cin, Np]; no Cin padding needed.
        w_p = jnp.zeros((kh * kw, cin, Np), jnp.bfloat16).at[:, :, :cout].set(
            w_folded.reshape(kh * kw, cin, cout).astype(jnp.bfloat16))
    else:
        K = kh * kw * cin
        if K % 128 == 0 or (K <= 128 and K % 8 == 0):
            Kp = K                          # e.g. 64-channel 1x1: no K padding
        else:
            Kp = _round_up(K, 128)
        w_p = jnp.zeros((Kp, Np), jnp.bfloat16).at[:K, :cout].set(
            w_folded.reshape(K, cout).astype(jnp.bfloat16))
    b_p = jnp.zeros((1, Np), jnp.float32).at[0, :cout].set(bias)
    return {'w': w_p, 'b': b_p, 'kh': kh, 'kw': kw, 'cin': cin, 'cout': cout,
            'stride': stride, 'pad': pad, 'taps': use_taps}


def make_bottleneck_params(key, cin, width, stride, expansion=4):
    keys = jax.random.split(key, 4)
    p = {
        'conv1': make_conv_bn(keys[0], 1, 1, cin, width, 1, 0),
        'conv2': make_conv_bn(keys[1], 3, 3, width, width, stride, 1),
        'conv3': make_conv_bn(keys[2], 1, 1, width, width * expansion, 1, 0),
    }
    if stride != 1 or cin != width * expansion:
        p['down'] = make_conv_bn(keys[3], 1, 1, cin, width * expansion,
                                 stride, 0)
    return p


def make_resnet50_params(key):
    expansion = 4
    layer_cfg = [(64, 3, 1), (128, 4, 2), (256, 6, 2), (512, 3, 2)]
    keys = jax.random.split(key, 2 + len(layer_cfg))
    params = {'conv1': make_conv_bn(keys[0], 7, 7, 3, 64, 2, 3)}
    layers = []
    cin = 64
    for li, (width, nblocks, stride) in enumerate(layer_cfg):
        bkeys = jax.random.split(keys[1 + li], nblocks)
        blocks = []
        for bi in range(nblocks):
            s = stride if bi == 0 else 1
            blocks.append(make_bottleneck_params(bkeys[bi], cin, width, s,
                                                 expansion))
            cin = width * expansion
        layers.append(blocks)
    params['layers'] = layers
    # fc: Linear(2048, 1)  (PyTorch default U(-k, k), k = 1/sqrt(in_features))
    k = 1.0 / jnp.sqrt(2048.0)
    kw_, kb_ = jax.random.split(keys[-1])
    fc_w = jax.random.uniform(kw_, (2048, 1), jnp.float32, -k, k)
    fc_b = jax.random.uniform(kb_, (1,), jnp.float32, -k, k)
    params['fc_w'] = jnp.zeros((2048, 128), jnp.bfloat16).at[:, :1].set(
        fc_w.astype(jnp.bfloat16))
    params['fc_b'] = jnp.zeros((1, 128), jnp.float32).at[0, :1].set(fc_b)
    return params


if __name__ == "__main__":
    root = jax.random.PRNGKey(0)
    k_params, k_input = jax.random.split(root)
    params = make_resnet50_params(k_params)

    # Small input consistent with the module: NCHW, 3 channels.
    x = jax.random.normal(k_input, (2, 3, 32, 32), jnp.float32)

    out = resnet50_forward(params, x)
    out = jax.block_until_ready(out)

    assert out.shape == (2, 1), out.shape
    assert bool(jnp.all(jnp.isfinite(out)))
    print("KERNEL_OK")
</pallas_src>

<mosaic_0001>
module attributes {stable_mosaic.version = 11 : i64} {
  func.func @_mm_kernel(%arg0: i32, %arg1: i32, %arg2: i32, %arg3: memref<256x256xbf16, #tpu.memory_space<vmem>>, %arg4: memref<256x128xbf16, #tpu.memory_space<vmem>>, %arg5: memref<1x128xf32, #tpu.memory_space<vmem>>, %arg6: memref<256x128xbf16, #tpu.memory_space<vmem>>) attributes {dimension_semantics = [#tpu.dimension_semantics<parallel>, #tpu.dimension_semantics<parallel>, #tpu.dimension_semantics<arbitrary>], iteration_bounds = array<i64: 2, 1, 1>, scalar_prefetch = 0 : i64, scratch_operands = 0 : i64, tpu.core_type = #tpu.core_type<tc>, window_params = [{transform_indices = @transform_0, window_bounds = array<i64: 256, 256>}, {transform_indices = @transform_1, window_bounds = array<i64: 256, 128>}, {transform_indices = @transform_2, window_bounds = array<i64: 1, 128>}, {transform_indices = @transform_3, window_bounds = array<i64: 256, 128>}]} {
    %c0 = arith.constant 0 : index
    %c0_0 = arith.constant 0 : index
    %0 = vector.load %arg3[%c0, %c0_0] : memref<256x256xbf16, #tpu.memory_space<vmem>>, vector<256x256xbf16>
    %c0_1 = arith.constant 0 : index
    %c0_2 = arith.constant 0 : index
    %1 = vector.load %arg4[%c0_1, %c0_2] : memref<256x128xbf16, #tpu.memory_space<vmem>>, vector<256x128xbf16>
    %cst = arith.constant dense<0.000000e+00> : vector<256x128xf32>
    %2 = tpu.matmul %0, %1, %cst {dimension_numbers = #tpu.dot_dimension_numbers<[1], [0], [0], [1], [0, 0, 1, 1], [], []>} : vector<256x256xbf16>, vector<256x128xbf16>, vector<256x128xf32> -> vector<256x128xf32>
    %c0_3 = arith.constant 0 : index
    %c0_4 = arith.constant 0 : index
    %3 = vector.load %arg5[%c0_3, %c0_4] : memref<1x128xf32, #tpu.memory_space<vmem>>, vector<1x128xf32>
    %4 = vector.broadcast %3 : vector<1x128xf32> to vector<256x128xf32>
    %5 = arith.addf %2, %4 : vector<256x128xf32>
    %cst_5 = arith.constant 0.000000e+00 : f32
    %6 = vector.broadcast %cst_5 : f32 to vector<256x128xf32>
    %7 = arith.maximumf %5, %6 : vector<256x128xf32>
    %8 = arith.truncf %7 : vector<256x128xf32> to vector<256x128xbf16>
    %c0_6 = arith.constant 0 : index
    %c0_7 = arith.constant 0 : index
    %9 = vector.load %arg6[%c0_6, %c0_7] : memref<256x128xbf16, #tpu.memory_space<vmem>>, vector<256x128xbf16>
    tpu.vector_store %arg6[%c0_6, %c0_7], %8 {strides = array<i32>} : memref<256x128xbf16, #tpu.memory_space<vmem>>, vector<256x128xbf16>,
    return
  }
  func.func @transform_0(%arg0: i32, %arg1: i32, %arg2: i32) -> (i32, i32) {
    %c0_i32 = arith.constant 0 : i32
    return %arg0, %arg2 : i32, i32
  }
  func.func @transform_1(%arg0: i32, %arg1: i32, %arg2: i32) -> (i32, i32) {
    %c0_i32 = arith.constant 0 : i32
    return %arg2, %arg1 : i32, i32
  }
  func.func @transform_2(%arg0: i32, %arg1: i32, %arg2: i32) -> (i32, i32) {
    %c0_i32 = arith.constant 0 : i32
    %c0_i32_0 = arith.constant 0 : i32
    return %c0_i32, %arg1 : i32, i32
  }
  func.func @transform_3(%arg0: i32, %arg1: i32, %arg2: i32) -> (i32, i32) {
    %c0_i32 = arith.constant 0 : i32
    return %arg0, %arg1 : i32, i32
  }
}

</mosaic_0001>

<bundles_post_ra>
// kernel: tpu_custom_call.1
= control target key start
LH: loop header
LB: loop body
LE: loop exit
PB: predicated region body
PF: predicated region fallthrough
CT: control target
= control target key end

     0   :  { %s1893_s0 = inlined_call_operand.hbm [shape: bf16[512,256], index: 0, kind: input, shape index: {}]   ;;  %s1894_s1 = inlined_call_operand.hbm [shape: bf16[256,128], index: 1, kind: input, shape index: {}]   ;;  %s1895_s2 = inlined_call_operand.vmem [shape: f32[1,128], index: 2, kind: input, shape index: {}]   ;;  %s1896_s3 = inlined_call_operand.hbm [shape: bf16[512,128], index: 3, kind: output, shape index: {}]  }
   0x1   :  { %1897 = sst [smem:[#allocation11_spill]] %s1894_s1 }
   0x2   :  { %8 = vsyncpa [#allocation3], 0 }
   0x3   :  { %10 = vsyncpa [#allocation3 + $0x1], 0 }
   0x4   :  { %11 = vsyncpa [#allocation6], 0 }
   0x5   :  { %12 = vsyncpa [#allocation4], 0 }
   0x6   :  { %14 = vsyncpa [#allocation4 + $0x1], 0  ;;  %s1621_s12 = smov 0   ;;  %s1623_s13 = smov 0  }
   0x7   :  { %s1625_s14 = smov 0   ;;  %s1627_s15 = smov 0  }
   0x8   :  { %s1629_s16 = smov 0   ;;  %s1631_s17 = smov 0  }
   0x9 LB: > { %s993_s18 = sadd.s32 4294967295, %s1592_s17   ;;  %s994_s19 = sadd.s32 4294967294, %s1592_s17   ;;  %s1592_s17 = sphi %s1631_s17, %s20_s17   ;;  %s1588_s16 = sphi %s1629_s16, %s1910_s16   ;;  %s1584_s15 = sphi %s1627_s15, %s1909_s15   ;;  %s1580_s14 = sphi %s1625_s14, %s1908_s14   ;;  %s1576_s13 = sphi %s1623_s13, %s1907_s13   ;;  %s1572_s12 = sphi %s1621_s12, %s1906_s12  }
   0xa   : > { %p61_p0 = scmp.ne.s32.totalorder %s1576_s13, %s1572_s12  ;;  %p1655_p1 = scmp.eq.s32.totalorder %s993_s18, 0 }
   0xb   : > { %p1659_p2 = scmp.eq.s32.totalorder %s993_s18, 1  ;;  %p147_p3 = scmp.eq.s32.totalorder %s994_s19, 1 }
   0xc   : > { %p1665_p4 = por %p1655_p1, %p61_p0  ;;  %p995_p5 = scmp.ge.s32.totalorder %s1592_s17, 1 }
   0xd   : > { %p1670_p6 = por %p147_p3, %p61_p0  ;;  %p154_p7 = scmp.lt.s32.totalorder %s1592_s17, 3 }
   0xe   : > { %s1902_s1 = sld [smem:[#allocation11_spill]]  ;;  %s1594_s28 = smov [#allocation5]  }
   0xf   : > { %p1678_p8 = pnand %p995_p5, %p154_p7  ;;  %s171_s29 = sshll.u32 %s1594_s28, 4  ;;  %s172_s29 = int_to_ptr.vmem [resolvable:$true] %s171_s29 }
  0x10   : > { %p998_p11 = scmp.ge.s32.totalorder %s1592_s17, 2  ;;  %s1595_s30 = smov 64  }
  0x11   : > { %p1374_p9 = pneg %p1678_p8  ;;  %s1596_s4 = smov 4  }
  0x12   : > { %s39_s5 = sadd.s32 1, %s1588_s16  ;;  %s48_s6 = sadd.s32 1, %s1580_s14 }
  0x13   : > { %p1375_p10 = pnand %p1374_p9, %p1655_p1  ;;  %p41_p12 = scmp.ge.s32.totalorder %s39_s5, 2 }
  0x14   : > { %s169_s26 = sshll.u32 %s1902_s1, 4  ;;  %p55_p13 = scmp.ne.s32.totalorder %s1580_s14, %s1576_s13  ;;  %s170_s26 = int_to_ptr.hbm [resolvable:$true] %s169_s26 }
  0x15   : > { %1377 = dma.hbm_to_vmem [thread:$0]  (!%p1375_p10), %s170_s26, 2048, %s172_s29, [#allocation6], %s1595_s30, %s1595_s30, %s1596_s4  }
  0x16   : > { %p56_p0 = scmp.eq.s32.totalorder %s1592_s17, 0  ;;  %s1912_s5 = smov (%p41_p12, %s39_s5), 0 }
  0x17   : > { %p1700_p5 = por %p1659_p2, %p55_p13  ;;  %s43_s9 = ssub.s32 %s1588_s16, %s1912_s5 }
  0x18   : > { %p1694_p3 = por %p56_p0, %p55_p13  ;;  %p1387_p7 = scmp.lt.s32.totalorder %s1592_s17, 2 }
  0x19   : > { %p46_p9 = scmp.eq.s32.totalorder %s43_s9, 0  ;;  %s191_s10 = sand.u32 1, %s1580_s14  }
  0x1a   : > { %s999_s11 = sshll.u32 %s191_s10, 8  ;;  %s1205_s19 = sshll.u32 %s1588_s16, 8 }
  0x1b   : > { %s1709_s18 = scalar_select %p46_p9, %s1580_s14, %s48_s6  }
  0x1c   : > { %s203_s26 = scalar_lea.hbm %s1893_s0, %s1205_s19  ;;  %s195_s28 = scalar_lea.vmem [#allocation2], %s999_s11 }
  0x1d   : > { %s206_s29 = sshll.u32 %s195_s28, 4  ;;  %s204_s21 = sshll.u32 %s203_s26, 4  ;;  %s207_s29 = int_to_ptr.vmem [resolvable:$true] %s206_s29  ;;  %s205_s21 = int_to_ptr.hbm [resolvable:$true] %s204_s21 }
  0x1e   : > { %p1379_p2 = pnand %p1387_p7, %p1694_p3  ;;  %s192_s30 = scalar_lea.sflag [#allocation3], %s191_s10 }
  0x1f   : > { %s1597_s4 = smov 128   ;;  %s1598_s1 = smov 8  }
  0x20   : > { %1381 = dma.hbm_to_vmem [thread:$0]  (!%p1379_p2), %s205_s21, 4096, %s207_s29, %s192_s30, %s1597_s4, %s1597_s4, %s1598_s1  }
  0x21   : > { %218 = sbr.rel (%p1678_p8) target bundleno = 337 (0x151), region = 32  ;;  %s1720_s6 = sand.u32 (!%p1678_p8), 1, %s1576_s13  }
  0x22   : > { %s1004_s9 = sshll.u32 (!%p1678_p8), %s1720_s6, 8  ;;  %s221_s11 = scalar_lea.sflag (!%p1678_p8), [#allocation3], %s1720_s6 }
  0x23   : > { %s1724_s19 = scalar_lea.vmem (!%p1678_p8), [#allocation2], %s1004_s9 }
  0x26   : > { %1559 = dma.done.wait (%p1665_p4), %s221_s11, 4096  }
  0x27   : > { %1561 = vsyncadd (%p1665_p4), %s221_s11, 4294963200 }
  0x28   : > { %1563 = dma.done.wait (%p1655_p1), [#allocation6], 2048  }
  0x29   : > { %1565 = vsyncadd (%p1655_p1), [#allocation6], 4294965248  ;;  %v1245_v0 = vld [vmem:[#allocation5 + $0x38] sm:$0xff]  ;;  %v1244_v2 = vld [vmem:[#allocation5 + $0x30] sm:$0xff]  ;;  %s1006_s22 = sshll.u32 %s1720_s6, 7  ;;  %s1254_s7 = sshll.u32 %s1584_s15, 7 }
  0x2a   : > { %v1253_v1 = vld [vmem:[#allocation5 + $0x78] sm:$0xff]  ;;  %587 = vmatpush.bf16.msra.mxu0 %v1245_v0  ;;  %1350 = vmatpush.bf16.msra.mxu2 %v1245_v0  ;;  %v1252_v3 = vld [vmem:[#allocation5 + $0x70] sm:$0xff]  ;;  %v1243_v4 = vld [vmem:[#allocation5 + $0x28] sm:$0xff]  ;;  %s1808_s27 = scalar_lea.vmem [#allocation7], %s1006_s22  ;;  %s874_s25 = scalar_lea.hbm %s1896_s3, %s1254_s7 }
  0x2b   : > { %676 = vmatpush.bf16.msra.mxu1 %v1253_v1  ;;  %1358 = vmatpush.bf16.msra.mxu3 %v1253_v1  ;;  %v1251_v5 = vld [vmem:[#allocation5 + $0x68] sm:$0xff]  ;;  %v1242_v6 = vld [vmem:[#allocation5 + $0x20] sm:$0xff]  ;;  %v1241_v8 = vld [vmem:[#allocation5 + $0x18] sm:$0xff]  ;;  %s875_s26 = sshll.u32 %s1808_s27, 4  ;;  %s877_s28 = sshll.u32 %s874_s25, 4  ;;  %s876_s26 = int_to_ptr.vmem [resolvable:$true] %s875_s26  ;;  %s878_s28 = int_to_ptr.hbm [resolvable:$true] %s877_s28 }
  0x2c   : > { %v1250_v7 = vld [vmem:[#allocation5 + $0x60] sm:$0xff]  ;;  %v1249_v9 = vld [vmem:[#allocation5 + $0x58] sm:$0xff]  ;;  %v1240_v10 = vld [vmem:[#allocation5 + $0x10] sm:$0xff]  ;;  %s862_s15 = scalar_lea.sflag [#allocation4], %s1720_s6  ;;  %s1520_s29 = sshra.s32 %s878_s28, 4  ;;  %s1521_s29 = int_to_ptr.hbm [resolvable:$true] %s1520_s29 }
  0x2d   : > { %v1248_v11 = vld [vmem:[#allocation5 + $0x50] sm:$0xff]  ;;  %v1239_v12 = vld [vmem:[#allocation5 + $0x8] sm:$0xff]  ;;  %v1238_v14 = vld [vmem:[#allocation5] sm:$0xff]  ;;  %s1522_s21 = scalar_lea.hbm %s1521_s29, 128  ;;  %s1526_s9 = scalar_lea.hbm %s1896_s3, 256 }
  0x2e   : > { %588 = vmatpush.bf16.msra.mxu0 %v1244_v2  ;;  %1351 = vmatpush.bf16.msra.mxu2 %v1244_v2  ;;  %v1247_v13 = vld [vmem:[#allocation5 + $0x48] sm:$0xff]  ;;  %v1246_v15 = vld [vmem:[#allocation5 + $0x40] sm:$0xff]  ;;  %v1017_v28 = vld [vmem:[%s1724_s19 + $0x10] sm:$0xf]  ;;  %p1523_p1 = scmp.ne.s32.totalorder %s1521_s29, %s1522_s21  ;;  %p1527_p10 = scmp.lt.s32.totalorder %s1521_s29, %s1896_s3 }
  0x2f   : > { %677 = vmatpush.bf16.msra.mxu1 %v1252_v3  ;;  %1359 = vmatpush.bf16.msra.mxu3 %v1252_v3  ;;  %v1009_v16 = vld [vmem:[%s1724_s19] sm:$0xf]  ;;  %v1207_v17 = vld [vmem:[%s1724_s19 + $0x4] sm:$0xf0]  ;;  %v1206_v20 = vld [vmem:[%s1724_s19 + $0x4] sm:$0xf]  ;;  %p1528_p12 = scmp.lt.s32.totalorder %s1526_s9, %s1522_s21 }
  0x30   : > { %v1073_v18 = vld [vmem:[%s1724_s19 + $0x80] sm:$0xf]  ;;  %v1223_v19 = vld [vmem:[%s1724_s19 + $0x84] sm:$0xf0]  ;;  %v1011_v21 = vld [vmem:[%s1724_s19 + $0x8] sm:$0xf0]  ;;  %v1010_v24 = vor.u32 %v1207_v17, %v1009_v16  ;;  %p1524_p4 = pnand %p1523_p1, %p1700_p5 }
  0x31   : > { %v1222_v22 = vld [vmem:[%s1724_s19 + $0x84] sm:$0xf]  ;;  %v1075_v23 = vld [vmem:[%s1724_s19 + $0x88] sm:$0xf0]  ;;  %v1074_v25 = vor.u32 %v1223_v19, %v1073_v18  ;;  %v1014_v26 = vor.u32 %v1206_v20, %v1011_v21  ;;  %v1209_v29 = vld [vmem:[%s1724_s19 + $0x14] sm:$0xf0]  ;;  %p1529_p13 = por %p1528_p12, %p1527_p10 }
  0x32   : > { %589 = vmatpush.bf16.msra.mxu0 %v1243_v4  ;;  %1352 = vmatpush.bf16.msra.mxu2 %v1243_v4  ;;  %v1078_v27 = vor.u32 %v1222_v22, %v1075_v23  ;;  %v1081_v30 = vld [vmem:[%s1724_s19 + $0x90] sm:$0xf]  ;;  %v1225_v31 = vld [vmem:[%s1724_s19 + $0x94] sm:$0xf0]  ;;  %v1208_v32 = vld [vmem:[%s1724_s19 + $0x14] sm:$0xf]  ;;  %v1018_v36 = vor.u32 %v1209_v29, %v1017_v28  ;;  %p1525_p8 = pneg %p1524_p4 }
  0x33   : > { %678 = vmatpush.bf16.msra.mxu1 %v1251_v5  ;;  %1360 = vmatpush.bf16.msra.mxu3 %v1251_v5  ;;  %v1019_v33 = vld [vmem:[%s1724_s19 + $0x18] sm:$0xf0]  ;;  %v1224_v34 = vld [vmem:[%s1724_s19 + $0x94] sm:$0xf]  ;;  %v1082_v37 = vor.u32 %v1225_v31, %v1081_v30  ;;  %v1025_v40 = vld [vmem:[%s1724_s19 + $0x20] sm:$0xf] }
  0x34   : > { %v1083_v35 = vld [vmem:[%s1724_s19 + $0x98] sm:$0xf0]  ;;  %v1022_v38 = vor.u32 %v1208_v32, %v1019_v33  ;;  %v1211_v41 = vld [vmem:[%s1724_s19 + $0x24] sm:$0xf0]  ;;  %v1089_v42 = vld [vmem:[%s1724_s19 + $0xa0] sm:$0xf]  ;;  %p1530_p0 = pnand %p1529_p13, %p1525_p8 }
  0x35   : > { %v1086_v39 = vor.u32 %v1224_v34, %v1083_v35  ;;  %v1227_v43 = vld [vmem:[%s1724_s19 + $0xa4] sm:$0xf0]  ;;  %v1210_v44 = vld [vmem:[%s1724_s19 + $0x24] sm:$0xf]  ;;  %v1027_v45 = vld [vmem:[%s1724_s19 + $0x28] sm:$0xf0]  ;;  %v1026_v48 = vor.u32 %v1211_v41, %v1025_v40 }
  0x36   : > { %590 = vmatpush.bf16.msra.mxu0 %v1242_v6  ;;  %1353 = vmatpush.bf16.msra.mxu2 %v1242_v6  ;;  %v1226_v46 = vld [vmem:[%s1724_s19 + $0xa4] sm:$0xf]  ;;  %v1091_v47 = vld [vmem:[%s1724_s19 + $0xa8] sm:$0xf0]  ;;  %v1090_v49 = vor.u32 %v1227_v43, %v1089_v42  ;;  %v1030_v50 = vor.u32 %v1210_v44, %v1027_v45  ;;  %v1033_v52 = vld [vmem:[%s1724_s19 + $0x30] sm:$0xf] }
  0x37   : > { %679 = vmatpush.bf16.msra.mxu1 %v1250_v7  ;;  %1361 = vmatpush.bf16.msra.mxu3 %v1250_v7  ;;  %v1094_v51 = vor.u32 %v1226_v46, %v1091_v47  ;;  %v1213_v53 = vld [vmem:[%s1724_s19 + $0x34] sm:$0xf0]  ;;  %v1097_v54 = vld [vmem:[%s1724_s19 + $0xb0] sm:$0xf]  ;;  %v1212_v56 = vld [vmem:[%s1724_s19 + $0x34] sm:$0xf] }
  0x38   : > { %v1229_v55 = vld [vmem:[%s1724_s19 + $0xb4] sm:$0xf0]  ;;  %v1035_v57 = vld [vmem:[%s1724_s19 + $0x38] sm:$0xf0]  ;;  %v1228_v58 = vld [vmem:[%s1724_s19 + $0xb4] sm:$0xf]  ;;  %v1034_v60 = vor.u32 %v1213_v53, %v1033_v52 }
  0x39   : > { %v1099_v59 = vld [vmem:[%s1724_s19 + $0xb8] sm:$0xf0]  ;;  %v1098_v61 = vor.u32 %v1229_v55, %v1097_v54  ;;  %v1038_v62 = vor.u32 %v1212_v56, %v1035_v57  ;;  %v1041_v0 = vld [vmem:[%s1724_s19 + $0x40] sm:$0xf]  ;;  %v1215_v1 = vld [vmem:[%s1724_s19 + $0x44] sm:$0xf0] }
  0x3a   : > { %591 = vmatpush.bf16.msra.mxu0 %v1241_v8  ;;  %1354 = vmatpush.bf16.msra.mxu2 %v1241_v8  ;;  %v1102_v63 = vor.u32 %v1228_v58, %v1099_v59  ;;  %v1105_v2 = vld [vmem:[%s1724_s19 + $0xc0] sm:$0xf]  ;;  %v1231_v3 = vld [vmem:[%s1724_s19 + $0xc4] sm:$0xf0]  ;;  %v1214_v4 = vld [vmem:[%s1724_s19 + $0x44] sm:$0xf]  ;;  %v1042_v8 = vor.u32 %v1215_v1, %v1041_v0 }
  0x3b   : > { %680 = vmatpush.bf16.msra.mxu1 %v1249_v9  ;;  %1362 = vmatpush.bf16.msra.mxu3 %v1249_v9  ;;  %v1043_v5 = vld [vmem:[%s1724_s19 + $0x48] sm:$0xf0]  ;;  %v1230_v6 = vld [vmem:[%s1724_s19 + $0xc4] sm:$0xf]  ;;  %v1106_v9 = vor.u32 %v1231_v3, %v1105_v2  ;;  %v1216_v16 = vld [vmem:[%s1724_s19 + $0x54] sm:$0xf] }
  0x3c   : > { %v1107_v7 = vld [vmem:[%s1724_s19 + $0xc8] sm:$0xf0]  ;;  %v1051_v17 = vld [vmem:[%s1724_s19 + $0x58] sm:$0xf0]  ;;  %v1232_v18 = vld [vmem:[%s1724_s19 + $0xd4] sm:$0xf] }
  0x3d   : > { %v1115_v19 = vld [vmem:[%s1724_s19 + $0xd8] sm:$0xf0]  ;;  %v1054_v22 = vor.u32 %v1216_v16, %v1051_v17  ;;  %v1218_v28 = vld [vmem:[%s1724_s19 + $0x64] sm:$0xf]  ;;  %v1059_v29 = vld [vmem:[%s1724_s19 + $0x68] sm:$0xf0] }
  0x3e   : > { %592 = vmatpush.bf16.msra.mxu0 %v1240_v10  ;;  %1355 = vmatpush.bf16.msra.mxu2 %v1240_v10  ;;  %v1046_v10 = vor.u32 %v1214_v4, %v1043_v5  ;;  %v1118_v23 = vor.u32 %v1232_v18, %v1115_v19  ;;  %v1234_v30 = vld [vmem:[%s1724_s19 + $0xe4] sm:$0xf]  ;;  %v1123_v31 = vld [vmem:[%s1724_s19 + $0xe8] sm:$0xf0]  ;;  %v1062_v34 = vor.u32 %v1218_v28, %v1059_v29  ;;  %v1220_v40 = vld [vmem:[%s1724_s19 + $0x74] sm:$0xf] }
  0x3f   : > { %681 = vmatpush.bf16.msra.mxu1 %v1248_v11  ;;  %1363 = vmatpush.bf16.msra.mxu3 %v1248_v11  ;;  %v1110_v11 = vor.u32 %v1230_v6, %v1107_v7  ;;  %v1126_v35 = vor.u32 %v1234_v30, %v1123_v31  ;;  %v1067_v41 = vld [vmem:[%s1724_s19 + $0x78] sm:$0xf0]  ;;  %v1236_v42 = vld [vmem:[%s1724_s19 + $0xf4] sm:$0xf] }
  0x40   : > { %v1131_v43 = vld [vmem:[%s1724_s19 + $0xf8] sm:$0xf0]  ;;  %v1070_v46 = vor.u32 %v1220_v40, %v1067_v41 }
  0x41   : > { %v1134_v47 = vor.u32 %v1236_v42, %v1131_v43 }
  0x42   : > { %593 = vmatpush.bf16.msra.mxu0 %v1239_v12  ;;  %1356 = vmatpush.bf16.msra.mxu2 %v1239_v12  ;;  %v1049_v12 = vld [vmem:[%s1724_s19 + $0x50] sm:$0xf] }
  0x43   : > { %682 = vmatpush.bf16.msra.mxu1 %v1247_v13  ;;  %1364 = vmatpush.bf16.msra.mxu3 %v1247_v13  ;;  %v1217_v13 = vld [vmem:[%s1724_s19 + $0x54] sm:$0xf0] }
  0x44   : > { %v1050_v20 = vor.u32 %v1217_v13, %v1049_v12 }
  0x46   : > { %594 = vmatpush.bf16.msra.mxu0 %v1238_v14  ;;  %1357 = vmatpush.bf16.msra.mxu2 %v1238_v14  ;;  %v1113_v14 = vld [vmem:[%s1724_s19 + $0xd0] sm:$0xf] }
  0x47   : > { %683 = vmatpush.bf16.msra.mxu1 %v1246_v15  ;;  %1365 = vmatpush.bf16.msra.mxu3 %v1246_v15  ;;  %v1233_v15 = vld [vmem:[%s1724_s19 + $0xd4] sm:$0xf0] }
  0x48   : > { %v1114_v21 = vor.u32 %v1233_v15, %v1113_v14 }
  0x49   : > { %595 = vmatmul.bf16.vlgmr.msra.gmra.mxu0 %v1010_v24  ;;  %635 = vmatmul.bf16.vlgmr.msra.gmra.mxu2 %v1074_v25  ;;  %v1057_v24 = vld [vmem:[%s1724_s19 + $0x60] sm:$0xf]  ;;  %v1219_v25 = vld [vmem:[%s1724_s19 + $0x64] sm:$0xf0] }
  0x4a   : > { %684 = vmatmul.bf16.vlgmr.msra.gmra.mxu1 %v1014_v26  ;;  %724 = vmatmul.bf16.vlgmr.msra.gmra.mxu3 %v1078_v27  ;;  %v1121_v26 = vld [vmem:[%s1724_s19 + $0xe0] sm:$0xf]  ;;  %v1235_v27 = vld [vmem:[%s1724_s19 + $0xe4] sm:$0xf0]  ;;  %v1058_v32 = vor.u32 %v1219_v25, %v1057_v24 }
  0x4b   : > { %v1122_v33 = vor.u32 %v1235_v27, %v1121_v26 }
  0x59   : > { %600 = vmatmul.bf16.gmra.mxu0 %v1018_v36  ;;  %640 = vmatmul.bf16.gmra.mxu2 %v1082_v37  ;;  %v1065_v36 = vld [vmem:[%s1724_s19 + $0x70] sm:$0xf]  ;;  %v1221_v37 = vld [vmem:[%s1724_s19 + $0x74] sm:$0xf0] }
  0x5a   : > { %689 = vmatmul.bf16.gmra.mxu1 %v1022_v38  ;;  %729 = vmatmul.bf16.gmra.mxu3 %v1086_v39  ;;  %v1129_v38 = vld [vmem:[%s1724_s19 + $0xf0] sm:$0xf]  ;;  %v1237_v39 = vld [vmem:[%s1724_s19 + $0xf4] sm:$0xf0]  ;;  %v1066_v44 = vor.u32 %v1221_v37, %v1065_v36 }
  0x5b   : > { %v1130_v45 = vor.u32 %v1237_v39, %v1129_v38 }
  0x69   : > { %605 = vmatmul.bf16.gmra.mxu0 %v1026_v48  ;;  %645 = vmatmul.bf16.gmra.mxu2 %v1090_v49  ;;  %v1801_v49 = vld [vmem:[%s1895_s2] ss:$0 sm:$0xff] }
  0x6a   : > { %694 = vmatmul.bf16.gmra.mxu1 %v1030_v50  ;;  %734 = vmatmul.bf16.gmra.mxu3 %v1094_v51 }
  0x79   : > { %610 = vmatmul.bf16.gmra.mxu0 %v1034_v60  ;;  %650 = vmatmul.bf16.gmra.mxu2 %v1098_v61 }
  0x7a   : > { %699 = vmatmul.bf16.gmra.mxu1 %v1038_v62  ;;  %739 = vmatmul.bf16.gmra.mxu3 %v1102_v63 }
  0x89   : > { %615 = vmatmul.bf16.gmra.mxu0 %v1042_v8  ;;  %655 = vmatmul.bf16.gmra.mxu2 %v1106_v9 }
  0x8a   : > { %704 = vmatmul.bf16.gmra.mxu1 %v1046_v10  ;;  %744 = vmatmul.bf16.gmra.mxu3 %v1110_v11 }
  0x99   : > { %620 = vmatmul.bf16.gmra.mxu0 %v1050_v20  ;;  %660 = vmatmul.bf16.gmra.mxu2 %v1114_v21 }
  0x9a   : > { %709 = vmatmul.bf16.gmra.mxu1 %v1054_v22  ;;  %749 = vmatmul.bf16.gmra.mxu3 %v1118_v23 }
  0xa9   : > { %625 = vmatmul.bf16.gmra.mxu0 %v1058_v32  ;;  %665 = vmatmul.bf16.gmra.mxu2 %v1122_v33 }
  0xaa   : > { %714 = vmatmul.bf16.gmra.mxu1 %v1062_v34  ;;  %754 = vmatmul.bf16.gmra.mxu3 %v1126_v35 }
  0xb9   : > { %630 = vmatmul.bf16.gmra.mxu0 %v1066_v44  ;;  %670 = vmatmul.bf16.gmra.mxu2 %v1130_v45 }
  0xba   : > { %719 = vmatmul.bf16.gmra.mxu1 %v1070_v46  ;;  %759 = vmatmul.bf16.gmra.mxu3 %v1134_v47 }
  0xc6   : > { %v596_v48 = vpop.f32.mrf.mxu0 }
  0xc7   : > { %v685_v50 = vpop.f32.mrf.mxu1  ;;  %v597_v51 = vadd.f32 %v1801_v49, %v596_v48 }
  0xc9   : > { %v686_v55 = vadd.f32 %v685_v50, %v597_v51 }
  0xcb   : > { %v765_v60 = vmax.f32 %v686_v55, 0.0 }
  0xcc   : > { %v636_v52 = vpop.f32.mrf.mxu2 }
  0xcd   : > { %v725_v53 = vpop.f32.mrf.mxu3  ;;  %v637_v58 = vadd.f32 %v1801_v49, %v636_v52 }
  0xce   : > { %v598_v54 = vpop.f32.mrf.mxu0 }
  0xcf   : > { %v599_v56 = vadd.f32 %v1801_v49, %v598_v54  ;;  %v687_v57 = vpop.f32.mrf.mxu1  ;;  %v726_v63 = vadd.f32 %v725_v53, %v637_v58 }
  0xd1   : > { %v688_v59 = vadd.f32 %v687_v57, %v599_v56  ;;  %v781_v6 = vmax.f32 %v726_v63, 0.0 }
  0xd3   : > { %v766_v61 = vmax.f32 %v688_v59, 0.0 }
  0xd4   : > { %v638_v62 = vpop.f32.mrf.mxu2 }
  0xd5   : > { %v1258_v0 = vpack.c.bf16 %v766_v61, %v765_v60  ;;  %v639_v1 = vadd.f32 %v1801_v49, %v638_v62  ;;  %v727_v2 = vpop.f32.mrf.mxu3 }
  0xd6   : > { %v601_v3 = vpop.f32.mrf.mxu0 }
  0xd7   : > { %1259 = vst [vmem:[%s1808_s27] sm:$0xff] %v1258_v0   ;;  %v728_v4 = vadd.f32 %v727_v2, %v639_v1  ;;  %v690_v5 = vpop.f32.mrf.mxu1  ;;  %v602_v9 = vadd.f32 %v1801_v49, %v601_v3 }
  0xd9   : > { %v782_v7 = vmax.f32 %v728_v4, 0.0  ;;  %v691_v13 = vadd.f32 %v690_v5, %v602_v9 }
  0xdb   : > { %v1298_v8 = vpack.c.bf16 %v782_v7, %v781_v6  ;;  %v767_v18 = vmax.f32 %v691_v13, 0.0 }
  0xdc   : > { %v641_v10 = vpop.f32.mrf.mxu2 }
  0xdd   : > { %1342 = vst [vmem:[%s1808_s27 + $0x40] sm:$0xff] %v1298_v8   ;;  %v730_v11 = vpop.f32.mrf.mxu3  ;;  %v642_v16 = vadd.f32 %v1801_v49, %v641_v10 }
  0xde   : > { %v603_v12 = vpop.f32.mrf.mxu0 }
  0xdf   : > { %v604_v14 = vadd.f32 %v1801_v49, %v603_v12  ;;  %v692_v15 = vpop.f32.mrf.mxu1  ;;  %v731_v21 = vadd.f32 %v730_v11, %v642_v16 }
  0xe1   : > { %v693_v17 = vadd.f32 %v692_v15, %v604_v14  ;;  %v783_v28 = vmax.f32 %v731_v21, 0.0 }
  0xe3   : > { %v768_v19 = vmax.f32 %v693_v17, 0.0 }
  0xe4   : > { %v643_v20 = vpop.f32.mrf.mxu2 }
  0xe5   : > { %v1263_v22 = vpack.c.bf16 %v768_v19, %v767_v18  ;;  %v644_v23 = vadd.f32 %v1801_v49, %v643_v20  ;;  %v732_v24 = vpop.f32.mrf.mxu3 }
  0xe6   : > { %v606_v25 = vpop.f32.mrf.mxu0 }
  0xe7   : > { %1335 = vst [vmem:[%s1808_s27 + $0x8] sm:$0xff] %v1263_v22   ;;  %v733_v26 = vadd.f32 %v732_v24, %v644_v23  ;;  %v695_v27 = vpop.f32.mrf.mxu1  ;;  %v607_v31 = vadd.f32 %v1801_v49, %v606_v25 }
  0xe9   : > { %v784_v29 = vmax.f32 %v733_v26, 0.0  ;;  %v696_v35 = vadd.f32 %v695_v27, %v607_v31 }
  0xeb   : > { %v1303_v30 = vpack.c.bf16 %v784_v29, %v783_v28  ;;  %v769_v40 = vmax.f32 %v696_v35, 0.0 }
  0xec   : > { %v646_v32 = vpop.f32.mrf.mxu2 }
  0xed   : > { %1343 = vst [vmem:[%s1808_s27 + $0x48] sm:$0xff] %v1303_v30   ;;  %v735_v33 = vpop.f32.mrf.mxu3  ;;  %v647_v38 = vadd.f32 %v1801_v49, %v646_v32 }
  0xee   : > { %v608_v34 = vpop.f32.mrf.mxu0 }
  0xef   : > { %v609_v36 = vadd.f32 %v1801_v49, %v608_v34  ;;  %v697_v37 = vpop.f32.mrf.mxu1  ;;  %v736_v43 = vadd.f32 %v735_v33, %v647_v38 }
  0xf1   : > { %v698_v39 = vadd.f32 %v697_v37, %v609_v36  ;;  %v785_v51 = vmax.f32 %v736_v43, 0.0 }
  0xf3   : > { %v770_v41 = vmax.f32 %v698_v39, 0.0 }
  0xf4   : > { %v648_v42 = vpop.f32.mrf.mxu2 }
  0xf5   : > { %v1268_v44 = vpack.c.bf16 %v770_v41, %v769_v40  ;;  %v649_v45 = vadd.f32 %v1801_v49, %v648_v42  ;;  %v737_v46 = vpop.f32.mrf.mxu3 }
  0xf6   : > { %v611_v47 = vpop.f32.mrf.mxu0 }
  0xf7   : > { %1336 = vst [vmem:[%s1808_s27 + $0x10] sm:$0xff] %v1268_v44   ;;  %v738_v48 = vadd.f32 %v737_v46, %v649_v45  ;;  %v700_v50 = vpop.f32.mrf.mxu1  ;;  %v612_v54 = vadd.f32 %v1801_v49, %v611_v47 }
  0xf9   : > { %v786_v52 = vmax.f32 %v738_v48, 0.0  ;;  %v701_v58 = vadd.f32 %v700_v50, %v612_v54 }
  0xfb   : > { %v1308_v53 = vpack.c.bf16 %v786_v52, %v785_v51  ;;  %v771_v63 = vmax.f32 %v701_v58, 0.0 }
  0xfc   : > { %v651_v55 = vpop.f32.mrf.mxu2 }
  0xfd   : > { %1344 = vst [vmem:[%s1808_s27 + $0x50] sm:$0xff] %v1308_v53   ;;  %v740_v56 = vpop.f32.mrf.mxu3  ;;  %v652_v61 = vadd.f32 %v1801_v49, %v651_v55 }
  0xfe   : > { %v613_v57 = vpop.f32.mrf.mxu0 }
  0xff   : > { %v614_v59 = vadd.f32 %v1801_v49, %v613_v57  ;;  %v702_v60 = vpop.f32.mrf.mxu1  ;;  %v741_v2 = vadd.f32 %v740_v56, %v652_v61 }
 0x101   : > { %v703_v62 = vadd.f32 %v702_v60, %v614_v59  ;;  %v787_v9 = vmax.f32 %v741_v2, 0.0 }
 0x103   : > { %v772_v0 = vmax.f32 %v703_v62, 0.0 }
 0x104   : > { %v653_v1 = vpop.f32.mrf.mxu2 }
 0x105   : > { %v1273_v3 = vpack.c.bf16 %v772_v0, %v771_v63  ;;  %v654_v4 = vadd.f32 %v1801_v49, %v653_v1  ;;  %v742_v5 = vpop.f32.mrf.mxu3 }
 0x106   : > { %v616_v6 = vpop.f32.mrf.mxu0 }
 0x107   : > { %1337 = vst [vmem:[%s1808_s27 + $0x18] sm:$0xff] %v1273_v3   ;;  %v743_v7 = vadd.f32 %v742_v5, %v654_v4  ;;  %v705_v8 = vpop.f32.mrf.mxu1  ;;  %v617_v12 = vadd.f32 %v1801_v49, %v616_v6 }
 0x109   : > { %v788_v10 = vmax.f32 %v743_v7, 0.0  ;;  %v706_v16 = vadd.f32 %v705_v8, %v617_v12 }
 0x10b   : > { %v1313_v11 = vpack.c.bf16 %v788_v10, %v787_v9  ;;  %v773_v21 = vmax.f32 %v706_v16, 0.0 }
 0x10c   : > { %v656_v13 = vpop.f32.mrf.mxu2 }
 0x10d   : > { %1345 = vst [vmem:[%s1808_s27 + $0x58] sm:$0xff] %v1313_v11   ;;  %v745_v14 = vpop.f32.mrf.mxu3  ;;  %v657_v19 = vadd.f32 %v1801_v49, %v656_v13 }
 0x10e   : > { %v618_v15 = vpop.f32.mrf.mxu0 }
 0x10f   : > { %v619_v17 = vadd.f32 %v1801_v49, %v618_v15  ;;  %v707_v18 = vpop.f32.mrf.mxu1  ;;  %v746_v24 = vadd.f32 %v745_v14, %v657_v19 }
 0x111   : > { %v708_v20 = vadd.f32 %v707_v18, %v619_v17  ;;  %v789_v31 = vmax.f32 %v746_v24, 0.0 }
 0x113   : > { %v774_v22 = vmax.f32 %v708_v20, 0.0 }
 0x114   : > { %v658_v23 = vpop.f32.mrf.mxu2 }
 0x115   : > { %v1278_v25 = vpack.c.bf16 %v774_v22, %v773_v21  ;;  %v659_v26 = vadd.f32 %v1801_v49, %v658_v23  ;;  %v747_v27 = vpop.f32.mrf.mxu3 }
 0x116   : > { %v621_v28 = vpop.f32.mrf.mxu0 }
 0x117   : > { %1338 = vst [vmem:[%s1808_s27 + $0x20] sm:$0xff] %v1278_v25   ;;  %v748_v29 = vadd.f32 %v747_v27, %v659_v26  ;;  %v710_v30 = vpop.f32.mrf.mxu1  ;;  %v622_v34 = vadd.f32 %v1801_v49, %v621_v28 }
 0x119   : > { %v790_v32 = vmax.f32 %v748_v29, 0.0  ;;  %v711_v38 = vadd.f32 %v710_v30, %v622_v34 }
 0x11b   : > { %v1318_v33 = vpack.c.bf16 %v790_v32, %v789_v31  ;;  %v775_v43 = vmax.f32 %v711_v38, 0.0 }
 0x11c   : > { %v661_v35 = vpop.f32.mrf.mxu2 }
 0x11d   : > { %1346 = vst [vmem:[%s1808_s27 + $0x60] sm:$0xff] %v1318_v33   ;;  %v750_v36 = vpop.f32.mrf.mxu3  ;;  %v662_v41 = vadd.f32 %v1801_v49, %v661_v35 }
 0x11e   : > { %v623_v37 = vpop.f32.mrf.mxu0 }
 0x11f   : > { %v624_v39 = vadd.f32 %v1801_v49, %v623_v37  ;;  %v712_v40 = vpop.f32.mrf.mxu1  ;;  %v751_v46 = vadd.f32 %v750_v36, %v662_v41 }
 0x121   : > { %v713_v42 = vadd.f32 %v712_v40, %v624_v39  ;;  %v791_v54 = vmax.f32 %v751_v46, 0.0 }
 0x123   : > { %v776_v44 = vmax.f32 %v713_v42, 0.0 }
 0x124   : > { %v663_v45 = vpop.f32.mrf.mxu2 }
 0x125   : > { %v1283_v47 = vpack.c.bf16 %v776_v44, %v775_v43  ;;  %v664_v48 = vadd.f32 %v1801_v49, %v663_v45  ;;  %v752_v50 = vpop.f32.mrf.mxu3 }
 0x126   : > { %v626_v51 = vpop.f32.mrf.mxu0 }
 0x127   : > { %1339 = vst [vmem:[%s1808_s27 + $0x28] sm:$0xff] %v1283_v47   ;;  %v753_v52 = vadd.f32 %v752_v50, %v664_v48  ;;  %v715_v53 = vpop.f32.mrf.mxu1  ;;  %v627_v57 = vadd.f32 %v1801_v49, %v626_v51 }
 0x129   : > { %v792_v55 = vmax.f32 %v753_v52, 0.0  ;;  %v716_v61 = vadd.f32 %v715_v53, %v627_v57 }
 0x12b   : > { %v1323_v56 = vpack.c.bf16 %v792_v55, %v791_v54  ;;  %v777_v2 = vmax.f32 %v716_v61, 0.0 }
 0x12c   : > { %v666_v58 = vpop.f32.mrf.mxu2 }
 0x12d   : > { %1347 = vst [vmem:[%s1808_s27 + $0x68] sm:$0xff] %v1323_v56   ;;  %v755_v59 = vpop.f32.mrf.mxu3  ;;  %v667_v0 = vadd.f32 %v1801_v49, %v666_v58 }
 0x12e   : > { %v628_v60 = vpop.f32.mrf.mxu0 }
 0x12f   : > { %v629_v62 = vadd.f32 %v1801_v49, %v628_v60  ;;  %v717_v63 = vpop.f32.mrf.mxu1  ;;  %v756_v5 = vadd.f32 %v755_v59, %v667_v0 }
 0x131   : > { %v718_v1 = vadd.f32 %v717_v63, %v629_v62  ;;  %v793_v12 = vmax.f32 %v756_v5, 0.0 }
 0x133   : > { %v778_v3 = vmax.f32 %v718_v1, 0.0 }
 0x134   : > { %v668_v4 = vpop.f32.mrf.mxu2 }
 0x135   : > { %v1288_v6 = vpack.c.bf16 %v778_v3, %v777_v2  ;;  %v669_v7 = vadd.f32 %v1801_v49, %v668_v4  ;;  %v757_v8 = vpop.f32.mrf.mxu3 }
 0x136   : > { %v631_v9 = vpop.f32.mrf.mxu0 }
 0x137   : > { %1340 = vst [vmem:[%s1808_s27 + $0x30] sm:$0xff] %v1288_v6   ;;  %v758_v10 = vadd.f32 %v757_v8, %v669_v7  ;;  %v720_v11 = vpop.f32.mrf.mxu1  ;;  %v632_v15 = vadd.f32 %v1801_v49, %v631_v9 }
 0x139   : > { %v794_v13 = vmax.f32 %v758_v10, 0.0  ;;  %v721_v19 = vadd.f32 %v720_v11, %v632_v15 }
 0x13b   : > { %v1328_v14 = vpack.c.bf16 %v794_v13, %v793_v12  ;;  %v779_v24 = vmax.f32 %v721_v19, 0.0 }
 0x13c   : > { %v671_v16 = vpop.f32.mrf.mxu2 }
 0x13d   : > { %1348 = vst [vmem:[%s1808_s27 + $0x70] sm:$0xff] %v1328_v14   ;;  %v760_v17 = vpop.f32.mrf.mxu3  ;;  %v672_v22 = vadd.f32 %v1801_v49, %v671_v16 }
 0x13e   : > { %v633_v18 = vpop.f32.mrf.mxu0 }
 0x13f   : > { %v634_v20 = vadd.f32 %v1801_v49, %v633_v18  ;;  %v722_v21 = vpop.f32.mrf.mxu1  ;;  %v761_v27 = vadd.f32 %v760_v17, %v672_v22 }
 0x141   : > { %v723_v23 = vadd.f32 %v722_v21, %v634_v20  ;;  %v795_v32 = vmax.f32 %v761_v27, 0.0 }
 0x143   : > { %v780_v25 = vmax.f32 %v723_v23, 0.0 }
 0x144   : > { %v673_v26 = vpop.f32.mrf.mxu2 }
 0x145   : > { %v1293_v28 = vpack.c.bf16 %v780_v25, %v779_v24  ;;  %v674_v29 = vadd.f32 %v1801_v49, %v673_v26  ;;  %v762_v30 = vpop.f32.mrf.mxu3 }
 0x147   : > { %1341 = vst [vmem:[%s1808_s27 + $0x38] sm:$0xff] %v1293_v28   ;;  %v763_v31 = vadd.f32 %v762_v30, %v674_v29 }
 0x149   : > { %v796_v33 = vmax.f32 %v763_v31, 0.0 }
 0x14b   : > { %v1333_v34 = vpack.c.bf16 %v796_v33, %v795_v32 }
 0x14d   : > { %1349 = vst [vmem:[%s1808_s27 + $0x78] sm:$0xff] %v1333_v34  }
 0x14e   : > { %1533 = shalt.err (!%p1530_p0)
}
 0x14f   : > { %s1599_s6 = smov 64   ;;  %s1600_s1 = smov 4  }
 0x150   : > { %1372 = dma.vmem_to_hbm [thread:$0]  (%p1700_p5), %s876_s26, 2048, %s878_s28, %s862_s15, %s1599_s6, %s1599_s6, %s1600_s1  }
 0x151 PF: > { %s892_s20 = sand.u32 1, %s1572_s12   ;;  %p1383_p3 = pnand %p998_p11, %p1670_p6 }
 0x152   : > { %s893_s22 = scalar_lea.sflag [#allocation4], %s892_s20 }
 0x153   : > { %p1384_p7 = pneg %p1383_p3 }
 0x155   : > { %1567 = dma.done.wait (%p1384_p7), %s893_s22, 2048  }
 0x156   : > { %1569 = vsyncadd (%p1384_p7), %s893_s22, 4294965248  ;;  %s20_s17 = sadd.s32 1, %s1592_s17   ;;  %s1906_s12 = smov %s1576_s13 }
 0x157   : > { %p17_p9 = scmp.ge.s32.totalorder %s20_s17, 4   ;;  %s1907_s13 = smov %s1580_s14 }
 0x158   : > { %s1908_s14 = smov %s1709_s18  ;;  %s1909_s15 = smov %s1588_s16 }
 0x159   : > { %s1910_s16 = smov %s1912_s5  ;;  %19 = sbr.rel (!%p17_p9) target bundleno = 9 (0x9), region = 85 }
 0x15e   :  { %899 = vsyncpa [#allocation3], 1 }
 0x15f   :  { %901 = vsyncpa [#allocation3 + $0x1], 1 }
 0x160   :  { %902 = vsyncpa [#allocation6], 1 }
 0x161   :  { %903 = vsyncpa [#allocation4], 1 }
 0x162   :  { %905 = vsyncpa [#allocation4 + $0x1], 1 }

</bundles_post_ra>
